<compile_context>
chip_gen: v5e
topology: v5e:2x2
jax: 0.10.0
libtpu: 0.0.40
codegen_flags: <defaults>
</compile_context>

<pallas_src>
import functools

import jax
import jax.numpy as jnp
from jax import lax
from jax.experimental import pallas as pl
from jax.experimental.pallas import tpu as pltpu

EPS = 1e-5


# ----------------------------- Pallas kernel ---------------------------------
def _fused_afe_kernel(p1_ref, w1_ref, w23_ref, gb_ref, out_ref,
                      c0_ref, c1_ref, c2_ref, c3_ref,
                      *, B, L1, H, eps):
    """Fused 3-layer Conv1d + BatchNorm1d(train) (+ ReLU) forward.

    Row conventions (batch-minor everywhere):
      * layer-1 rows come pre-ordered (t1 % 4, t1 // 4, b)  -> classes c0..c3
      * class / parity scratch buffers hold [B pad][Q*B content][B pad] rows, so every
        stride-2 conv tap is a contiguous window buf[(1+shift)*B : (1+shift)*B + Q*B]
      * layer-2 even/odd activations reuse c0_ref / c1_ref after the class taps are read
      * output rows are (t3, b); the wrapper transposes back to [B, T', H]
    """
    Q = L1 // 4            # final time length T' and per-class content length
    W = B * Q              # rows of every tap window / parity block
    M1 = B * L1
    M2 = B * (L1 // 2)
    M3 = B * Q

    gb = gb_ref[...]       # [6, H]: (g1, b1, g2, b2, g3, b3)

    def bn_affine(blocks, layer_idx, relu, m_rows):
        # Single-pass training-mode BN over the concatenation of `blocks` (per channel).
        gamma = gb[2 * layer_idx:2 * layer_idx + 1, :]          # [1, H]
        beta = gb[2 * layer_idx + 1:2 * layer_idx + 2, :]       # [1, H]
        s = blocks[0].sum(axis=0, keepdims=True)
        ss = (blocks[0] * blocks[0]).sum(axis=0, keepdims=True)
        for blk in blocks[1:]:
            s = s + blk.sum(axis=0, keepdims=True)
            ss = ss + (blk * blk).sum(axis=0, keepdims=True)
        inv_m = 1.0 / m_rows
        mean = s * inv_m
        var = ss * inv_m - mean * mean
        scale = gamma * lax.rsqrt(var + eps)                    # [1, H]
        shift = beta - mean * scale                             # [1, H]
        outs = []
        for blk in blocks:
            y = blk * scale + shift
            if relu:
                y = jnp.maximum(y, 0.0)
            outs.append(y)
        return outs

    zero_rows = jnp.zeros((B, H), jnp.float32)

    def fill(buf_ref, content):                  # content: [W, H]
        buf_ref[0:B, :] = zero_rows              # left time-pad (one step, all batches)
        buf_ref[B:B + W, :] = content
        buf_ref[B + W:2 * B + W, :] = zero_rows  # right time-pad

    def win(buf_ref, shift):                     # taps at content index q = i + shift
        lo = (1 + shift) * B
        return buf_ref[lo:lo + W, :]

    def tap_sum(w_taps, x_taps):                 # sum_k x_taps[k] @ w_taps[k]
        acc = jnp.dot(x_taps[0], w_taps[0], preferred_element_type=jnp.float32)
        for k in range(1, 4):
            acc = acc + jnp.dot(x_taps[k], w_taps[k], preferred_element_type=jnp.float32)
        return acc

    w2 = [w23_ref[k] for k in range(4)]          # layer-2 taps, each [H, H]
    w3 = [w23_ref[4 + k] for k in range(4)]      # layer-3 taps, each [H, H]

    # ---- layer 1: conv(k=16, s=8, p=4) as im2col matmul, BN, ReLU -------------------
    z1 = jnp.dot(p1_ref[...], w1_ref[...], preferred_element_type=jnp.float32)  # [M1, H]
    (y1,) = bn_affine([z1], 0, True, M1)
    for c, buf in enumerate((c0_ref, c1_ref, c2_ref, c3_ref)):
        fill(buf, y1[c * W:(c + 1) * W, :])      # class c holds times t1 = 4q + c

    # ---- layer 2: conv(k=4, s=2, p=1), BN, ReLU -- even/odd output rows separately --
    z2e = tap_sum(w2, (win(c3_ref, -1), win(c0_ref, 0), win(c1_ref, 0), win(c2_ref, 0)))
    z2o = tap_sum(w2, (win(c1_ref, 0), win(c2_ref, 0), win(c3_ref, 0), win(c0_ref, +1)))
    y2e, y2o = bn_affine([z2e, z2o], 1, True, M2)
    fill(c0_ref, y2e)                            # even t2 rows (buffer reuse)
    fill(c1_ref, y2o)                            # odd  t2 rows (buffer reuse)

    # ---- layer 3: conv(k=4, s=2, p=1), BN (no ReLU) ---------------------------------
    z3 = tap_sum(w3, (win(c1_ref, -1), win(c0_ref, 0), win(c1_ref, 0), win(c0_ref, +1)))
    (y3,) = bn_affine([z3], 2, False, M3)
    out_ref[...] = y3.astype(out_ref.dtype)


# ------------------------------- glue -----------------------------------------
def _im2col_1d(x, kernel, stride, padding):
    """x: [B, C, L] -> patches [B*L_out, C*kernel] (rows ordered (b, t)), L_out."""
    B, C, L = x.shape
    x_pad = jnp.pad(x, ((0, 0), (0, 0), (padding, padding)))
    L_out = (L + 2 * padding - kernel) // stride + 1
    # K static strided slices instead of an XLA gather.
    cols = [lax.slice_in_dim(x_pad, k, k + (L_out - 1) * stride + 1, stride, axis=2)
            for k in range(kernel)]                   # each [B, C, L_out]
    patches = jnp.stack(cols, axis=-1)                # [B, C, L_out, K]
    patches = jnp.transpose(patches, (0, 2, 1, 3))    # [B, L_out, C, K]
    return patches.reshape(B * L_out, C * kernel), L_out


def audio_feature_extractor(x, params):
    """x: [B, in_channels, T] -> [B, T', hidden_dim] via a single fused Pallas kernel."""
    assert len(params) == 3, "fused kernel implements the default n_layers=3 topology"
    p1, p2, p3 = params
    for p in (p2, p3):
        assert p["w"].shape[2] == 4 and p["stride"] == 2 and p["pad"] == 1

    B, C_in, _ = x.shape
    H = p1["w"].shape[0]
    K1 = p1["w"].shape[2]
    CK1 = C_in * K1

    patches, L1 = _im2col_1d(x, K1, p1["stride"], p1["pad"])   # [B*L1, CK1]
    if L1 % 4 != 0:
        raise ValueError("fused kernel needs layer-1 output length divisible by 4")
    Q = L1 // 4                                                # final time length T'
    M3 = B * Q

    # Reorder layer-1 rows to (t1 % 4, t1 // 4, b): the stride-2 convs of layers 2-3 then
    # only need contiguous VMEM slices inside the kernel (BN is row-permutation invariant).
    patches = (patches.reshape(B, Q, 4, CK1)
                      .transpose(2, 1, 0, 3)
                      .reshape(4 * Q * B, CK1))

    w1_mat = p1["w"].reshape(H, CK1).T                         # [CK1, H]
    w2_taps = jnp.transpose(p2["w"], (2, 1, 0))                # [4, H, H]  (k, c_in, c_out)
    w3_taps = jnp.transpose(p3["w"], (2, 1, 0))                # [4, H, H]
    w23 = jnp.concatenate([w2_taps, w3_taps], axis=0)          # [8, H, H]  single operand
    gb = jnp.stack([p1["gamma"], p1["beta"],
                    p2["gamma"], p2["beta"],
                    p3["gamma"], p3["beta"]], axis=0)          # [6, H]     single operand
    # NOTE: conv biases are intentionally not passed -- training-mode BN cancels them exactly.

    kernel = functools.partial(_fused_afe_kernel, B=B, L1=L1, H=H, eps=EPS)
    buf_shape = ((Q + 2) * B, H)

    out = pl.pallas_call(
        kernel,
        out_shape=jax.ShapeDtypeStruct((M3, H), jnp.float32),
        grid=(1,),
        in_specs=[
            pl.BlockSpec((B * L1, CK1), lambda i: (0, 0)),
            pl.BlockSpec((CK1, H), lambda i: (0, 0)),
            pl.BlockSpec((8, H, H), lambda i: (0, 0, 0)),
            pl.BlockSpec((6, H), lambda i: (0, 0)),
        ],
        out_specs=pl.BlockSpec((M3, H), lambda i: (0, 0)),
        scratch_shapes=[pltpu.VMEM(buf_shape, jnp.float32) for _ in range(4)],
        compiler_params=pltpu.CompilerParams(dimension_semantics=("arbitrary",)),
    )(patches, w1_mat, w23, gb)

    # kernel output rows are (t3, b) batch-minor -> [B, T', H]
    return out.reshape(Q, B, H).transpose(1, 0, 2)


# --------------------------- parameter init -----------------------------------
def init_params(key, in_channels=1, hidden_dim=128, n_layers=3):
    specs = [(in_channels, hidden_dim, 16, 8, 4, True)]
    for _ in range(n_layers - 2):
        specs.append((hidden_dim, hidden_dim, 4, 2, 1, True))
    specs.append((hidden_dim, hidden_dim, 4, 2, 1, False))

    params = []
    for (cin, cout, k, s, pad, relu) in specs:
        key, kw, kb, kg, kbe = jax.random.split(key, 5)
        params.append(dict(
            w=0.1 * jax.random.normal(kw, (cout, cin, k), jnp.float32),
            b=0.1 * jax.random.normal(kb, (cout,), jnp.float32),
            gamma=1.0 + 0.1 * jax.random.normal(kg, (cout,), jnp.float32),
            beta=0.1 * jax.random.normal(kbe, (cout,), jnp.float32),
            stride=s, pad=pad, relu=relu,
        ))
    return params


# ------------------------------ reference -------------------------------------
def reference(x, params):
    for p in params:
        z = lax.conv_general_dilated(
            x, p["w"], window_strides=(p["stride"],),
            padding=[(p["pad"], p["pad"])],
            dimension_numbers=("NCH", "OIH", "NCH"))
        z = z + p["b"][None, :, None]
        mean = jnp.mean(z, axis=(0, 2), keepdims=True)
        var = jnp.mean((z - mean) ** 2, axis=(0, 2), keepdims=True)
        z = (z - mean) / jnp.sqrt(var + EPS) * p["gamma"][None, :, None] + p["beta"][None, :, None]
        if p["relu"]:
            z = jnp.maximum(z, 0.0)
        x = z
    return jnp.transpose(x, (0, 2, 1))


# --------------------------------- main ----------------------------------------
if __name__ == "__main__":
    key = jax.random.PRNGKey(0)
    k_x, k_p = jax.random.split(key)

    batch, in_channels, hidden_dim, n_layers, time_steps = 2, 1, 128, 3, 128
    x = jax.random.normal(k_x, (batch, in_channels, time_steps), jnp.float32)
    params = init_params(k_p, in_channels, hidden_dim, n_layers)

    out = audio_feature_extractor(x, params)
    out = jax.block_until_ready(out)

    # Expected time': ((128+8-16)//8+1)=16 -> (16+2-4)//2+1=8 -> (8+2-4)//2+1=4
    assert out.shape == (batch, 4, hidden_dim), out.shape

    ref = jax.block_until_ready(reference(x, params))
    err = float(jnp.max(jnp.abs(out - ref)))
    assert jnp.allclose(out, ref, atol=2e-4, rtol=2e-4), err

    print("KERNEL_OK")
</pallas_src>

<mosaic_0001>
module attributes {stable_mosaic.version = 11 : i64} {
  func.func @_fused_afe_kernel(%arg0: i32, %arg1: memref<32x16xf32, #tpu.memory_space<vmem>>, %arg2: memref<16x128xf32, #tpu.memory_space<vmem>>, %arg3: memref<8x128x128xf32, #tpu.memory_space<vmem>>, %arg4: memref<6x128xf32, #tpu.memory_space<vmem>>, %arg5: memref<8x128xf32, #tpu.memory_space<vmem>>, %arg6: memref<12x128xf32, #tpu.memory_space<vmem>>, %arg7: memref<12x128xf32, #tpu.memory_space<vmem>>, %arg8: memref<12x128xf32, #tpu.memory_space<vmem>>, %arg9: memref<12x128xf32, #tpu.memory_space<vmem>>) attributes {dimension_semantics = [#tpu.dimension_semantics<arbitrary>], iteration_bounds = array<i64: 1>, scalar_prefetch = 0 : i64, scratch_operands = 4 : i64, tpu.core_type = #tpu.core_type<tc>, window_params = [{pipeline_mode = #tpu.pipeline_mode<synchronous>, transform_indices = @transform_0, window_bounds = array<i64: 32, 16>}, {pipeline_mode = #tpu.pipeline_mode<synchronous>, transform_indices = @transform_1, window_bounds = array<i64: 16, 128>}, {pipeline_mode = #tpu.pipeline_mode<synchronous>, transform_indices = @transform_2, window_bounds = array<i64: 8, 128, 128>}, {pipeline_mode = #tpu.pipeline_mode<synchronous>, transform_indices = @transform_3, window_bounds = array<i64: 6, 128>}, {pipeline_mode = #tpu.pipeline_mode<synchronous>, transform_indices = @transform_4, window_bounds = array<i64: 8, 128>}]} {
    %c0 = arith.constant 0 : index
    %c0_0 = arith.constant 0 : index
    %0 = vector.load %arg4[%c0, %c0_0] : memref<6x128xf32, #tpu.memory_space<vmem>>, vector<6x128xf32>
    %cst = arith.constant 0.000000e+00 : f32
    %1 = vector.broadcast %cst : f32 to vector<2x128xf32>
    %c0_1 = arith.constant 0 : index
    %c0_2 = arith.constant 0 : index
    %c0_3 = arith.constant 0 : index
    %2 = vector.load %arg3[%c0_1, %c0_2, %c0_3] : memref<8x128x128xf32, #tpu.memory_space<vmem>>, vector<1x128x128xf32>
    %3 = vector.shape_cast %2 : vector<1x128x128xf32> to vector<128x128xf32>
    %c1 = arith.constant 1 : index
    %c0_4 = arith.constant 0 : index
    %c0_5 = arith.constant 0 : index
    %4 = vector.load %arg3[%c1, %c0_4, %c0_5] : memref<8x128x128xf32, #tpu.memory_space<vmem>>, vector<1x128x128xf32>
    %5 = vector.shape_cast %4 : vector<1x128x128xf32> to vector<128x128xf32>
    %c2 = arith.constant 2 : index
    %c0_6 = arith.constant 0 : index
    %c0_7 = arith.constant 0 : index
    %6 = vector.load %arg3[%c2, %c0_6, %c0_7] : memref<8x128x128xf32, #tpu.memory_space<vmem>>, vector<1x128x128xf32>
    %7 = vector.shape_cast %6 : vector<1x128x128xf32> to vector<128x128xf32>
    %c3 = arith.constant 3 : index
    %c0_8 = arith.constant 0 : index
    %c0_9 = arith.constant 0 : index
    %8 = vector.load %arg3[%c3, %c0_8, %c0_9] : memref<8x128x128xf32, #tpu.memory_space<vmem>>, vector<1x128x128xf32>
    %9 = vector.shape_cast %8 : vector<1x128x128xf32> to vector<128x128xf32>
    %c4 = arith.constant 4 : index
    %c0_10 = arith.constant 0 : index
    %c0_11 = arith.constant 0 : index
    %10 = vector.load %arg3[%c4, %c0_10, %c0_11] : memref<8x128x128xf32, #tpu.memory_space<vmem>>, vector<1x128x128xf32>
    %11 = vector.shape_cast %10 : vector<1x128x128xf32> to vector<128x128xf32>
    %c5 = arith.constant 5 : index
    %c0_12 = arith.constant 0 : index
    %c0_13 = arith.constant 0 : index
    %12 = vector.load %arg3[%c5, %c0_12, %c0_13] : memref<8x128x128xf32, #tpu.memory_space<vmem>>, vector<1x128x128xf32>
    %13 = vector.shape_cast %12 : vector<1x128x128xf32> to vector<128x128xf32>
    %c6 = arith.constant 6 : index
    %c0_14 = arith.constant 0 : index
    %c0_15 = arith.constant 0 : index
    %14 = vector.load %arg3[%c6, %c0_14, %c0_15] : memref<8x128x128xf32, #tpu.memory_space<vmem>>, vector<1x128x128xf32>
    %15 = vector.shape_cast %14 : vector<1x128x128xf32> to vector<128x128xf32>
    %c7 = arith.constant 7 : index
    %c0_16 = arith.constant 0 : index
    %c0_17 = arith.constant 0 : index
    %16 = vector.load %arg3[%c7, %c0_16, %c0_17] : memref<8x128x128xf32, #tpu.memory_space<vmem>>, vector<1x128x128xf32>
    %17 = vector.shape_cast %16 : vector<1x128x128xf32> to vector<128x128xf32>
    %c0_18 = arith.constant 0 : index
    %c0_19 = arith.constant 0 : index
    %18 = vector.load %arg1[%c0_18, %c0_19] : memref<32x16xf32, #tpu.memory_space<vmem>>, vector<32x16xf32>
    %c0_20 = arith.constant 0 : index
    %c0_21 = arith.constant 0 : index
    %19 = vector.load %arg2[%c0_20, %c0_21] : memref<16x128xf32, #tpu.memory_space<vmem>>, vector<16x128xf32>
    %cst_22 = arith.constant dense<0.000000e+00> : vector<32x128xf32>
    %20 = tpu.matmul %18, %19, %cst_22 {dimension_numbers = #tpu.dot_dimension_numbers<[1], [0], [0], [1], [0, 0, 1, 1], [], []>} : vector<32x16xf32>, vector<16x128xf32>, vector<32x128xf32> -> vector<32x128xf32>
    %21 = vector.extract_strided_slice %0 {offsets = [0, 0], sizes = [1, 128], strides = [1, 1]} : vector<6x128xf32> to vector<1x128xf32>
    %22 = vector.extract_strided_slice %0 {offsets = [1, 0], sizes = [1, 128], strides = [1, 1]} : vector<6x128xf32> to vector<1x128xf32>
    %cst_23 = arith.constant dense<0.000000e+00> : vector<128xf32>
    %23 = vector.multi_reduction <add>, %20, %cst_23 [0] : vector<32x128xf32> to vector<128xf32>
    %24 = vector.shape_cast %23 : vector<128xf32> to vector<1x128xf32>
    %25 = arith.mulf %20, %20 : vector<32x128xf32>
    %cst_24 = arith.constant dense<0.000000e+00> : vector<128xf32>
    %26 = vector.multi_reduction <add>, %25, %cst_24 [0] : vector<32x128xf32> to vector<128xf32>
    %27 = vector.shape_cast %26 : vector<128xf32> to vector<1x128xf32>
    %cst_25 = arith.constant 3.125000e-02 : f32
    %28 = vector.broadcast %cst_25 : f32 to vector<1x128xf32>
    %29 = arith.mulf %24, %28 : vector<1x128xf32>
    %cst_26 = arith.constant 3.125000e-02 : f32
    %30 = vector.broadcast %cst_26 : f32 to vector<1x128xf32>
    %31 = arith.mulf %27, %30 : vector<1x128xf32>
    %32 = arith.mulf %29, %29 : vector<1x128xf32>
    %33 = arith.subf %31, %32 : vector<1x128xf32>
    %cst_27 = arith.constant 9.99999974E-6 : f32
    %34 = vector.broadcast %cst_27 : f32 to vector<1x128xf32>
    %35 = arith.addf %33, %34 : vector<1x128xf32>
    %36 = math.rsqrt %35 : vector<1x128xf32>
    %37 = arith.mulf %21, %36 : vector<1x128xf32>
    %38 = arith.mulf %29, %37 : vector<1x128xf32>
    %39 = arith.subf %22, %38 : vector<1x128xf32>
    %40 = vector.broadcast %37 : vector<1x128xf32> to vector<32x128xf32>
    %41 = arith.mulf %20, %40 : vector<32x128xf32>
    %42 = vector.broadcast %39 : vector<1x128xf32> to vector<32x128xf32>
    %43 = arith.addf %41, %42 : vector<32x128xf32>
    %cst_28 = arith.constant 0.000000e+00 : f32
    %44 = vector.broadcast %cst_28 : f32 to vector<32x128xf32>
    %45 = arith.maximumf %43, %44 : vector<32x128xf32>
    %46 = vector.extract_strided_slice %45 {offsets = [0, 0], sizes = [8, 128], strides = [1, 1]} : vector<32x128xf32> to vector<8x128xf32>
    %c0_29 = arith.constant 0 : index
    %c0_30 = arith.constant 0 : index
    %47 = vector.load %arg6[%c0_29, %c0_30] : memref<12x128xf32, #tpu.memory_space<vmem>>, vector<2x128xf32>
    tpu.vector_store %arg6[%c0_29, %c0_30], %1 {strides = array<i32>} : memref<12x128xf32, #tpu.memory_space<vmem>>, vector<2x128xf32>,
    %c2_31 = arith.constant 2 : index
    %c0_32 = arith.constant 0 : index
    %48 = vector.load %arg6[%c2_31, %c0_32] : memref<12x128xf32, #tpu.memory_space<vmem>>, vector<8x128xf32>
    tpu.vector_store %arg6[%c2_31, %c0_32], %46 {strides = array<i32>} : memref<12x128xf32, #tpu.memory_space<vmem>>, vector<8x128xf32>,
    %c10 = arith.constant 10 : index
    %c0_33 = arith.constant 0 : index
    %49 = vector.load %arg6[%c10, %c0_33] : memref<12x128xf32, #tpu.memory_space<vmem>>, vector<2x128xf32>
    tpu.vector_store %arg6[%c10, %c0_33], %1 {strides = array<i32>} : memref<12x128xf32, #tpu.memory_space<vmem>>, vector<2x128xf32>,
    %50 = vector.extract_strided_slice %45 {offsets = [8, 0], sizes = [8, 128], strides = [1, 1]} : vector<32x128xf32> to vector<8x128xf32>
    %c0_34 = arith.constant 0 : index
    %c0_35 = arith.constant 0 : index
    %51 = vector.load %arg7[%c0_34, %c0_35] : memref<12x128xf32, #tpu.memory_space<vmem>>, vector<2x128xf32>
    tpu.vector_store %arg7[%c0_34, %c0_35], %1 {strides = array<i32>} : memref<12x128xf32, #tpu.memory_space<vmem>>, vector<2x128xf32>,
    %c2_36 = arith.constant 2 : index
    %c0_37 = arith.constant 0 : index
    %52 = vector.load %arg7[%c2_36, %c0_37] : memref<12x128xf32, #tpu.memory_space<vmem>>, vector<8x128xf32>
    tpu.vector_store %arg7[%c2_36, %c0_37], %50 {strides = array<i32>} : memref<12x128xf32, #tpu.memory_space<vmem>>, vector<8x128xf32>,
    %c10_38 = arith.constant 10 : index
    %c0_39 = arith.constant 0 : index
    %53 = vector.load %arg7[%c10_38, %c0_39] : memref<12x128xf32, #tpu.memory_space<vmem>>, vector<2x128xf32>
    tpu.vector_store %arg7[%c10_38, %c0_39], %1 {strides = array<i32>} : memref<12x128xf32, #tpu.memory_space<vmem>>, vector<2x128xf32>,
    %54 = vector.extract_strided_slice %45 {offsets = [16, 0], sizes = [8, 128], strides = [1, 1]} : vector<32x128xf32> to vector<8x128xf32>
    %c0_40 = arith.constant 0 : index
    %c0_41 = arith.constant 0 : index
    %55 = vector.load %arg8[%c0_40, %c0_41] : memref<12x128xf32, #tpu.memory_space<vmem>>, vector<2x128xf32>
    tpu.vector_store %arg8[%c0_40, %c0_41], %1 {strides = array<i32>} : memref<12x128xf32, #tpu.memory_space<vmem>>, vector<2x128xf32>,
    %c2_42 = arith.constant 2 : index
    %c0_43 = arith.constant 0 : index
    %56 = vector.load %arg8[%c2_42, %c0_43] : memref<12x128xf32, #tpu.memory_space<vmem>>, vector<8x128xf32>
    tpu.vector_store %arg8[%c2_42, %c0_43], %54 {strides = array<i32>} : memref<12x128xf32, #tpu.memory_space<vmem>>, vector<8x128xf32>,
    %c10_44 = arith.constant 10 : index
    %c0_45 = arith.constant 0 : index
    %57 = vector.load %arg8[%c10_44, %c0_45] : memref<12x128xf32, #tpu.memory_space<vmem>>, vector<2x128xf32>
    tpu.vector_store %arg8[%c10_44, %c0_45], %1 {strides = array<i32>} : memref<12x128xf32, #tpu.memory_space<vmem>>, vector<2x128xf32>,
    %58 = vector.extract_strided_slice %45 {offsets = [24, 0], sizes = [8, 128], strides = [1, 1]} : vector<32x128xf32> to vector<8x128xf32>
    %c0_46 = arith.constant 0 : index
    %c0_47 = arith.constant 0 : index
    %59 = vector.load %arg9[%c0_46, %c0_47] : memref<12x128xf32, #tpu.memory_space<vmem>>, vector<2x128xf32>
    tpu.vector_store %arg9[%c0_46, %c0_47], %1 {strides = array<i32>} : memref<12x128xf32, #tpu.memory_space<vmem>>, vector<2x128xf32>,
    %c2_48 = arith.constant 2 : index
    %c0_49 = arith.constant 0 : index
    %60 = vector.load %arg9[%c2_48, %c0_49] : memref<12x128xf32, #tpu.memory_space<vmem>>, vector<8x128xf32>
    tpu.vector_store %arg9[%c2_48, %c0_49], %58 {strides = array<i32>} : memref<12x128xf32, #tpu.memory_space<vmem>>, vector<8x128xf32>,
    %c10_50 = arith.constant 10 : index
    %c0_51 = arith.constant 0 : index
    %61 = vector.load %arg9[%c10_50, %c0_51] : memref<12x128xf32, #tpu.memory_space<vmem>>, vector<2x128xf32>
    tpu.vector_store %arg9[%c10_50, %c0_51], %1 {strides = array<i32>} : memref<12x128xf32, #tpu.memory_space<vmem>>, vector<2x128xf32>,
    %c0_52 = arith.constant 0 : index
    %c0_53 = arith.constant 0 : index
    %62 = vector.load %arg9[%c0_52, %c0_53] : memref<12x128xf32, #tpu.memory_space<vmem>>, vector<8x128xf32>
    %c2_54 = arith.constant 2 : index
    %c0_55 = arith.constant 0 : index
    %63 = vector.load %arg6[%c2_54, %c0_55] : memref<12x128xf32, #tpu.memory_space<vmem>>, vector<8x128xf32>
    %c2_56 = arith.constant 2 : index
    %c0_57 = arith.constant 0 : index
    %64 = vector.load %arg7[%c2_56, %c0_57] : memref<12x128xf32, #tpu.memory_space<vmem>>, vector<8x128xf32>
    %c2_58 = arith.constant 2 : index
    %c0_59 = arith.constant 0 : index
    %65 = vector.load %arg8[%c2_58, %c0_59] : memref<12x128xf32, #tpu.memory_space<vmem>>, vector<8x128xf32>
    %cst_60 = arith.constant dense<0.000000e+00> : vector<8x128xf32>
    %66 = tpu.matmul %62, %3, %cst_60 {dimension_numbers = #tpu.dot_dimension_numbers<[1], [0], [0], [1], [0, 0, 1, 1], [], []>} : vector<8x128xf32>, vector<128x128xf32>, vector<8x128xf32> -> vector<8x128xf32>
    %cst_61 = arith.constant dense<0.000000e+00> : vector<8x128xf32>
    %67 = tpu.matmul %63, %5, %cst_61 {dimension_numbers = #tpu.dot_dimension_numbers<[1], [0], [0], [1], [0, 0, 1, 1], [], []>} : vector<8x128xf32>, vector<128x128xf32>, vector<8x128xf32> -> vector<8x128xf32>
    %68 = arith.addf %66, %67 : vector<8x128xf32>
    %cst_62 = arith.constant dense<0.000000e+00> : vector<8x128xf32>
    %69 = tpu.matmul %64, %7, %cst_62 {dimension_numbers = #tpu.dot_dimension_numbers<[1], [0], [0], [1], [0, 0, 1, 1], [], []>} : vector<8x128xf32>, vector<128x128xf32>, vector<8x128xf32> -> vector<8x128xf32>
    %70 = arith.addf %68, %69 : vector<8x128xf32>
    %cst_63 = arith.constant dense<0.000000e+00> : vector<8x128xf32>
    %71 = tpu.matmul %65, %9, %cst_63 {dimension_numbers = #tpu.dot_dimension_numbers<[1], [0], [0], [1], [0, 0, 1, 1], [], []>} : vector<8x128xf32>, vector<128x128xf32>, vector<8x128xf32> -> vector<8x128xf32>
    %72 = arith.addf %70, %71 : vector<8x128xf32>
    %c2_64 = arith.constant 2 : index
    %c0_65 = arith.constant 0 : index
    %73 = vector.load %arg7[%c2_64, %c0_65] : memref<12x128xf32, #tpu.memory_space<vmem>>, vector<8x128xf32>
    %c2_66 = arith.constant 2 : index
    %c0_67 = arith.constant 0 : index
    %74 = vector.load %arg8[%c2_66, %c0_67] : memref<12x128xf32, #tpu.memory_space<vmem>>, vector<8x128xf32>
    %c2_68 = arith.constant 2 : index
    %c0_69 = arith.constant 0 : index
    %75 = vector.load %arg9[%c2_68, %c0_69] : memref<12x128xf32, #tpu.memory_space<vmem>>, vector<8x128xf32>
    %c4_70 = arith.constant 4 : index
    %c0_71 = arith.constant 0 : index
    %76 = vector.load %arg6[%c4_70, %c0_71] : memref<12x128xf32, #tpu.memory_space<vmem>>, vector<8x128xf32>
    %cst_72 = arith.constant dense<0.000000e+00> : vector<8x128xf32>
    %77 = tpu.matmul %73, %3, %cst_72 {dimension_numbers = #tpu.dot_dimension_numbers<[1], [0], [0], [1], [0, 0, 1, 1], [], []>} : vector<8x128xf32>, vector<128x128xf32>, vector<8x128xf32> -> vector<8x128xf32>
    %cst_73 = arith.constant dense<0.000000e+00> : vector<8x128xf32>
    %78 = tpu.matmul %74, %5, %cst_73 {dimension_numbers = #tpu.dot_dimension_numbers<[1], [0], [0], [1], [0, 0, 1, 1], [], []>} : vector<8x128xf32>, vector<128x128xf32>, vector<8x128xf32> -> vector<8x128xf32>
    %79 = arith.addf %77, %78 : vector<8x128xf32>
    %cst_74 = arith.constant dense<0.000000e+00> : vector<8x128xf32>
    %80 = tpu.matmul %75, %7, %cst_74 {dimension_numbers = #tpu.dot_dimension_numbers<[1], [0], [0], [1], [0, 0, 1, 1], [], []>} : vector<8x128xf32>, vector<128x128xf32>, vector<8x128xf32> -> vector<8x128xf32>
    %81 = arith.addf %79, %80 : vector<8x128xf32>
    %cst_75 = arith.constant dense<0.000000e+00> : vector<8x128xf32>
    %82 = tpu.matmul %76, %9, %cst_75 {dimension_numbers = #tpu.dot_dimension_numbers<[1], [0], [0], [1], [0, 0, 1, 1], [], []>} : vector<8x128xf32>, vector<128x128xf32>, vector<8x128xf32> -> vector<8x128xf32>
    %83 = arith.addf %81, %82 : vector<8x128xf32>
    %84 = vector.extract_strided_slice %0 {offsets = [2, 0], sizes = [1, 128], strides = [1, 1]} : vector<6x128xf32> to vector<1x128xf32>
    %85 = vector.extract_strided_slice %0 {offsets = [3, 0], sizes = [1, 128], strides = [1, 1]} : vector<6x128xf32> to vector<1x128xf32>
    %cst_76 = arith.constant dense<0.000000e+00> : vector<128xf32>
    %86 = vector.multi_reduction <add>, %72, %cst_76 [0] : vector<8x128xf32> to vector<128xf32>
    %87 = vector.shape_cast %86 : vector<128xf32> to vector<1x128xf32>
    %88 = arith.mulf %72, %72 : vector<8x128xf32>
    %cst_77 = arith.constant dense<0.000000e+00> : vector<128xf32>
    %89 = vector.multi_reduction <add>, %88, %cst_77 [0] : vector<8x128xf32> to vector<128xf32>
    %90 = vector.shape_cast %89 : vector<128xf32> to vector<1x128xf32>
    %cst_78 = arith.constant dense<0.000000e+00> : vector<128xf32>
    %91 = vector.multi_reduction <add>, %83, %cst_78 [0] : vector<8x128xf32> to vector<128xf32>
    %92 = vector.shape_cast %91 : vector<128xf32> to vector<1x128xf32>
    %93 = arith.addf %87, %92 : vector<1x128xf32>
    %94 = arith.mulf %83, %83 : vector<8x128xf32>
    %cst_79 = arith.constant dense<0.000000e+00> : vector<128xf32>
    %95 = vector.multi_reduction <add>, %94, %cst_79 [0] : vector<8x128xf32> to vector<128xf32>
    %96 = vector.shape_cast %95 : vector<128xf32> to vector<1x128xf32>
    %97 = arith.addf %90, %96 : vector<1x128xf32>
    %cst_80 = arith.constant 6.250000e-02 : f32
    %98 = vector.broadcast %cst_80 : f32 to vector<1x128xf32>
    %99 = arith.mulf %93, %98 : vector<1x128xf32>
    %cst_81 = arith.constant 6.250000e-02 : f32
    %100 = vector.broadcast %cst_81 : f32 to vector<1x128xf32>
    %101 = arith.mulf %97, %100 : vector<1x128xf32>
    %102 = arith.mulf %99, %99 : vector<1x128xf32>
    %103 = arith.subf %101, %102 : vector<1x128xf32>
    %cst_82 = arith.constant 9.99999974E-6 : f32
    %104 = vector.broadcast %cst_82 : f32 to vector<1x128xf32>
    %105 = arith.addf %103, %104 : vector<1x128xf32>
    %106 = math.rsqrt %105 : vector<1x128xf32>
    %107 = arith.mulf %84, %106 : vector<1x128xf32>
    %108 = arith.mulf %99, %107 : vector<1x128xf32>
    %109 = arith.subf %85, %108 : vector<1x128xf32>
    %110 = vector.broadcast %107 : vector<1x128xf32> to vector<8x128xf32>
    %111 = arith.mulf %72, %110 : vector<8x128xf32>
    %112 = vector.broadcast %109 : vector<1x128xf32> to vector<8x128xf32>
    %113 = arith.addf %111, %112 : vector<8x128xf32>
    %cst_83 = arith.constant 0.000000e+00 : f32
    %114 = vector.broadcast %cst_83 : f32 to vector<8x128xf32>
    %115 = arith.maximumf %113, %114 : vector<8x128xf32>
    %116 = vector.broadcast %107 : vector<1x128xf32> to vector<8x128xf32>
    %117 = arith.mulf %83, %116 : vector<8x128xf32>
    %118 = vector.broadcast %109 : vector<1x128xf32> to vector<8x128xf32>
    %119 = arith.addf %117, %118 : vector<8x128xf32>
    %cst_84 = arith.constant 0.000000e+00 : f32
    %120 = vector.broadcast %cst_84 : f32 to vector<8x128xf32>
    %121 = arith.maximumf %119, %120 : vector<8x128xf32>
    %c0_85 = arith.constant 0 : index
    %c0_86 = arith.constant 0 : index
    %122 = vector.load %arg6[%c0_85, %c0_86] : memref<12x128xf32, #tpu.memory_space<vmem>>, vector<2x128xf32>
    tpu.vector_store %arg6[%c0_85, %c0_86], %1 {strides = array<i32>} : memref<12x128xf32, #tpu.memory_space<vmem>>, vector<2x128xf32>,
    %c2_87 = arith.constant 2 : index
    %c0_88 = arith.constant 0 : index
    %123 = vector.load %arg6[%c2_87, %c0_88] : memref<12x128xf32, #tpu.memory_space<vmem>>, vector<8x128xf32>
    tpu.vector_store %arg6[%c2_87, %c0_88], %115 {strides = array<i32>} : memref<12x128xf32, #tpu.memory_space<vmem>>, vector<8x128xf32>,
    %c10_89 = arith.constant 10 : index
    %c0_90 = arith.constant 0 : index
    %124 = vector.load %arg6[%c10_89, %c0_90] : memref<12x128xf32, #tpu.memory_space<vmem>>, vector<2x128xf32>
    tpu.vector_store %arg6[%c10_89, %c0_90], %1 {strides = array<i32>} : memref<12x128xf32, #tpu.memory_space<vmem>>, vector<2x128xf32>,
    %c0_91 = arith.constant 0 : index
    %c0_92 = arith.constant 0 : index
    %125 = vector.load %arg7[%c0_91, %c0_92] : memref<12x128xf32, #tpu.memory_space<vmem>>, vector<2x128xf32>
    tpu.vector_store %arg7[%c0_91, %c0_92], %1 {strides = array<i32>} : memref<12x128xf32, #tpu.memory_space<vmem>>, vector<2x128xf32>,
    %c2_93 = arith.constant 2 : index
    %c0_94 = arith.constant 0 : index
    %126 = vector.load %arg7[%c2_93, %c0_94] : memref<12x128xf32, #tpu.memory_space<vmem>>, vector<8x128xf32>
    tpu.vector_store %arg7[%c2_93, %c0_94], %121 {strides = array<i32>} : memref<12x128xf32, #tpu.memory_space<vmem>>, vector<8x128xf32>,
    %c10_95 = arith.constant 10 : index
    %c0_96 = arith.constant 0 : index
    %127 = vector.load %arg7[%c10_95, %c0_96] : memref<12x128xf32, #tpu.memory_space<vmem>>, vector<2x128xf32>
    tpu.vector_store %arg7[%c10_95, %c0_96], %1 {strides = array<i32>} : memref<12x128xf32, #tpu.memory_space<vmem>>, vector<2x128xf32>,
    %c0_97 = arith.constant 0 : index
    %c0_98 = arith.constant 0 : index
    %128 = vector.load %arg7[%c0_97, %c0_98] : memref<12x128xf32, #tpu.memory_space<vmem>>, vector<8x128xf32>
    %c2_99 = arith.constant 2 : index
    %c0_100 = arith.constant 0 : index
    %129 = vector.load %arg6[%c2_99, %c0_100] : memref<12x128xf32, #tpu.memory_space<vmem>>, vector<8x128xf32>
    %c2_101 = arith.constant 2 : index
    %c0_102 = arith.constant 0 : index
    %130 = vector.load %arg7[%c2_101, %c0_102] : memref<12x128xf32, #tpu.memory_space<vmem>>, vector<8x128xf32>
    %c4_103 = arith.constant 4 : index
    %c0_104 = arith.constant 0 : index
    %131 = vector.load %arg6[%c4_103, %c0_104] : memref<12x128xf32, #tpu.memory_space<vmem>>, vector<8x128xf32>
    %cst_105 = arith.constant dense<0.000000e+00> : vector<8x128xf32>
    %132 = tpu.matmul %128, %11, %cst_105 {dimension_numbers = #tpu.dot_dimension_numbers<[1], [0], [0], [1], [0, 0, 1, 1], [], []>} : vector<8x128xf32>, vector<128x128xf32>, vector<8x128xf32> -> vector<8x128xf32>
    %cst_106 = arith.constant dense<0.000000e+00> : vector<8x128xf32>
    %133 = tpu.matmul %129, %13, %cst_106 {dimension_numbers = #tpu.dot_dimension_numbers<[1], [0], [0], [1], [0, 0, 1, 1], [], []>} : vector<8x128xf32>, vector<128x128xf32>, vector<8x128xf32> -> vector<8x128xf32>
    %134 = arith.addf %132, %133 : vector<8x128xf32>
    %cst_107 = arith.constant dense<0.000000e+00> : vector<8x128xf32>
    %135 = tpu.matmul %130, %15, %cst_107 {dimension_numbers = #tpu.dot_dimension_numbers<[1], [0], [0], [1], [0, 0, 1, 1], [], []>} : vector<8x128xf32>, vector<128x128xf32>, vector<8x128xf32> -> vector<8x128xf32>
    %136 = arith.addf %134, %135 : vector<8x128xf32>
    %cst_108 = arith.constant dense<0.000000e+00> : vector<8x128xf32>
    %137 = tpu.matmul %131, %17, %cst_108 {dimension_numbers = #tpu.dot_dimension_numbers<[1], [0], [0], [1], [0, 0, 1, 1], [], []>} : vector<8x128xf32>, vector<128x128xf32>, vector<8x128xf32> -> vector<8x128xf32>
    %138 = arith.addf %136, %137 : vector<8x128xf32>
    %139 = vector.extract_strided_slice %0 {offsets = [4, 0], sizes = [1, 128], strides = [1, 1]} : vector<6x128xf32> to vector<1x128xf32>
    %140 = vector.extract_strided_slice %0 {offsets = [5, 0], sizes = [1, 128], strides = [1, 1]} : vector<6x128xf32> to vector<1x128xf32>
    %cst_109 = arith.constant dense<0.000000e+00> : vector<128xf32>
    %141 = vector.multi_reduction <add>, %138, %cst_109 [0] : vector<8x128xf32> to vector<128xf32>
    %142 = vector.shape_cast %141 : vector<128xf32> to vector<1x128xf32>
    %143 = arith.mulf %138, %138 : vector<8x128xf32>
    %cst_110 = arith.constant dense<0.000000e+00> : vector<128xf32>
    %144 = vector.multi_reduction <add>, %143, %cst_110 [0] : vector<8x128xf32> to vector<128xf32>
    %145 = vector.shape_cast %144 : vector<128xf32> to vector<1x128xf32>
    %cst_111 = arith.constant 1.250000e-01 : f32
    %146 = vector.broadcast %cst_111 : f32 to vector<1x128xf32>
    %147 = arith.mulf %142, %146 : vector<1x128xf32>
    %cst_112 = arith.constant 1.250000e-01 : f32
    %148 = vector.broadcast %cst_112 : f32 to vector<1x128xf32>
    %149 = arith.mulf %145, %148 : vector<1x128xf32>
    %150 = arith.mulf %147, %147 : vector<1x128xf32>
    %151 = arith.subf %149, %150 : vector<1x128xf32>
    %cst_113 = arith.constant 9.99999974E-6 : f32
    %152 = vector.broadcast %cst_113 : f32 to vector<1x128xf32>
    %153 = arith.addf %151, %152 : vector<1x128xf32>
    %154 = math.rsqrt %153 : vector<1x128xf32>
    %155 = arith.mulf %139, %154 : vector<1x128xf32>
    %156 = arith.mulf %147, %155 : vector<1x128xf32>
    %157 = arith.subf %140, %156 : vector<1x128xf32>
    %158 = vector.broadcast %155 : vector<1x128xf32> to vector<8x128xf32>
    %159 = arith.mulf %138, %158 : vector<8x128xf32>
    %160 = vector.broadcast %157 : vector<1x128xf32> to vector<8x128xf32>
    %161 = arith.addf %159, %160 : vector<8x128xf32>
    %c0_114 = arith.constant 0 : index
    %c0_115 = arith.constant 0 : index
    %162 = vector.load %arg5[%c0_114, %c0_115] : memref<8x128xf32, #tpu.memory_space<vmem>>, vector<8x128xf32>
    tpu.vector_store %arg5[%c0_114, %c0_115], %161 {strides = array<i32>} : memref<8x128xf32, #tpu.memory_space<vmem>>, vector<8x128xf32>,
    return
  }
  func.func @transform_0(%arg0: i32) -> (i32, i32) {
    %c0_i32 = arith.constant 0 : i32
    %c0_i32_0 = arith.constant 0 : i32
    %c0_i32_1 = arith.constant 0 : i32
    return %c0_i32, %c0_i32_0 : i32, i32
  }
  func.func @transform_1(%arg0: i32) -> (i32, i32) {
    %c0_i32 = arith.constant 0 : i32
    %c0_i32_0 = arith.constant 0 : i32
    %c0_i32_1 = arith.constant 0 : i32
    return %c0_i32, %c0_i32_0 : i32, i32
  }
  func.func @transform_2(%arg0: i32) -> (i32, i32, i32) {
    %c0_i32 = arith.constant 0 : i32
    %c0_i32_0 = arith.constant 0 : i32
    %c0_i32_1 = arith.constant 0 : i32
    %c0_i32_2 = arith.constant 0 : i32
    return %c0_i32, %c0_i32_0, %c0_i32_1 : i32, i32, i32
  }
  func.func @transform_3(%arg0: i32) -> (i32, i32) {
    %c0_i32 = arith.constant 0 : i32
    %c0_i32_0 = arith.constant 0 : i32
    %c0_i32_1 = arith.constant 0 : i32
    return %c0_i32, %c0_i32_0 : i32, i32
  }
  func.func @transform_4(%arg0: i32) -> (i32, i32) {
    %c0_i32 = arith.constant 0 : i32
    %c0_i32_0 = arith.constant 0 : i32
    %c0_i32_1 = arith.constant 0 : i32
    return %c0_i32, %c0_i32_0 : i32, i32
  }
}

</mosaic_0001>

<bundles_post_ra>
// kernel: tpu_custom_call.1
= control target key start
LH: loop header
LB: loop body
LE: loop exit
PB: predicated region body
PF: predicated region fallthrough
CT: control target
= control target key end

     0   :  { %9 = vsyncpa [#allocation7], 0  ;;  %s1098_s0 = inlined_call_operand.vmem [shape: f32[32,16], index: 0, kind: input, shape index: {}]   ;;  %s1099_s1 = inlined_call_operand.vmem [shape: f32[16,128], index: 1, kind: input, shape index: {}]   ;;  %s1100_s2 = inlined_call_operand.hbm [shape: f32[8,128,128], index: 2, kind: input, shape index: {}]   ;;  %s1101_s3 = inlined_call_operand.vmem [shape: f32[6,128], index: 3, kind: input, shape index: {}]   ;;  %s1102_s4 = inlined_call_operand.hbm [shape: f32[8,128], index: 4, kind: output, shape index: {}]  }
   0x1   :  { %10 = vsyncpa [#allocation8], 0  ;;  %s19_s17 = sshll.u32 %s1100_s2, 4  ;;  %s729_s18 = smov [#allocation6]   ;;  %s20_s17 = int_to_ptr.hbm [resolvable:$true] %s19_s17 }
   0x2   :  { %s21_s19 = sshll.u32 %s729_s18, 4  ;;  %s730_s20 = smov 128   ;;  %s22_s19 = int_to_ptr.vmem [resolvable:$true] %s21_s19 }
   0x3   :  { %s731_s21 = smov 8  }
   0x4   :  { %27 = dma.hbm_to_vmem [thread:$0]  %s20_s17, 16384, %s22_s19, [#allocation7], %s730_s20, %s730_s20, %s731_s21  }
   0x5   :  { %725 = dma.done.wait [#allocation7], 16384  }
   0x6   :  { %726 = vsyncadd [#allocation7], 4294950912  ;;  %v175_v0 = vld [vmem:[%s1099_s1 + $0x8] sm:$0xff]  ;;  %v174_v1 = vld [vmem:[%s1099_s1] sm:$0xff]  ;;  %vm176_vm0 = vcmask 130048   ;;  %s652_s10 = sshll.u32 %s1102_s4, 4  ;;  %s653_s10 = int_to_ptr.hbm [resolvable:$true] %s652_s10 }
   0x7   :  { %203 = vmatpush.msra.mxu0 %v175_v0  ;;  %v170_v2 = vld [vmem:[%s1098_s0] sm:$0xff]  ;;  %v171_v3 = vld [vmem:[%s1098_s0 + $0x8] sm:$0xff]  ;;  %v172_v4 = vld [vmem:[%s1098_s0 + $0x10] sm:$0xff] }
   0x8   :  { %v173_v5 = vld [vmem:[%s1098_s0 + $0x18] sm:$0xff]  ;;  %v780_v6 = vld [vmem:[#allocation6 + $0xf8] sm:$0xff]  ;;  %v789_v9 = vld [vmem:[#allocation6 + $0xf0] sm:$0xff] }
   0x9   :  { %204 = vmatpush.msra.mxu0 %v174_v1  ;;  %v782_v7 = vld [vmem:[#allocation6 + $0x178] sm:$0xff]  ;;  %291 = vmatpush.msra.mxu1 %v780_v6  ;;  %v791_v10 = vld [vmem:[#allocation6 + $0x170] sm:$0xff]  ;;  %v798_v12 = vld [vmem:[#allocation6 + $0xe8] sm:$0xff] }
   0xa   :  { %662 = vmatmul.msk.f32.vlgmr.msra.gmra.mxu0 %vm176_vm0, %v170_v2  ;;  %v784_v8 = vld [vmem:[#allocation6 + $0x1f8] sm:$0xff]  ;;  %331 = vmatpush.msra.mxu3 %v782_v7  ;;  %v793_v11 = vld [vmem:[#allocation6 + $0x1f0] sm:$0xff]  ;;  %v800_v13 = vld [vmem:[#allocation6 + $0x168] sm:$0xff] }
   0xb   :  { %352 = vmatpush.msrb.mxu0 %v784_v8  ;;  %292 = vmatpush.msra.mxu1 %v789_v9  ;;  %v802_v14 = vld [vmem:[#allocation6 + $0x1e8] sm:$0xff]  ;;  %v809_v16 = vld [vmem:[#allocation6 + $0xe0] sm:$0xff]  ;;  %v817_v19 = vld [vmem:[#allocation6 + $0x78] sm:$0xff] }
   0xc   :  { %332 = vmatpush.msra.mxu3 %v791_v10  ;;  %v811_v17 = vld [vmem:[#allocation6 + $0x160] sm:$0xff]  ;;  %v820_v20 = vld [vmem:[#allocation6 + $0xd8] sm:$0xff]  ;;  %311 = vmatpush.msra.mxu2 %v817_v19  ;;  %v828_v23 = vld [vmem:[#allocation6 + $0x70] sm:$0xff] }
   0xd   :  { %353 = vmatpush.msrb.mxu0 %v793_v11  ;;  %293 = vmatpush.msra.mxu1 %v798_v12  ;;  %v813_v18 = vld [vmem:[#allocation6 + $0x1e0] sm:$0xff]  ;;  %v822_v21 = vld [vmem:[#allocation6 + $0x158] sm:$0xff]  ;;  %v832_v24 = vld [vmem:[#allocation6 + $0xd0] sm:$0xff] }
   0xe   :  { %333 = vmatpush.msra.mxu3 %v800_v13  ;;  %v826_v22 = vld [vmem:[#allocation6 + $0x1d8] sm:$0xff]  ;;  %v834_v25 = vld [vmem:[#allocation6 + $0x150] sm:$0xff]  ;;  %312 = vmatpush.msra.mxu2 %v828_v23  ;;  %v840_v27 = vld [vmem:[#allocation6 + $0x68] sm:$0xff] }
   0xf   :  { %354 = vmatpush.msrb.mxu0 %v802_v14  ;;  %294 = vmatpush.msra.mxu1 %v809_v16  ;;  %v838_v26 = vld [vmem:[#allocation6 + $0x1d0] sm:$0xff]  ;;  %v844_v28 = vld [vmem:[#allocation6 + $0xc8] sm:$0xff]  ;;  %v854_v32 = vld [vmem:[#allocation6 + $0x60] sm:$0xff] }
  0x10   :  { %334 = vmatpush.msra.mxu3 %v811_v17  ;;  %v846_v29 = vld [vmem:[#allocation6 + $0x148] sm:$0xff]  ;;  %313 = vmatpush.msra.mxu2 %v840_v27  ;;  %v858_v33 = vld [vmem:[#allocation6 + $0xc0] sm:$0xff]  ;;  %v866_v36 = vld [vmem:[#allocation6 + $0x58] sm:$0xff] }
  0x11   :  { %355 = vmatpush.msrb.mxu0 %v813_v18  ;;  %295 = vmatpush.msra.mxu1 %v820_v20  ;;  %v850_v30 = vld [vmem:[#allocation6 + $0x1c8] sm:$0xff]  ;;  %v860_v34 = vld [vmem:[#allocation6 + $0x140] sm:$0xff]  ;;  %v870_v37 = vld [vmem:[#allocation6 + $0xb8] sm:$0xff] }
  0x12   :  { %663 = vmatmul.msk.f32.gmra.mxu0 %vm176_vm0, %v171_v3  ;;  %335 = vmatpush.msra.mxu3 %v822_v21  ;;  %v864_v35 = vld [vmem:[#allocation6 + $0x1c0] sm:$0xff]  ;;  %v872_v38 = vld [vmem:[#allocation6 + $0x138] sm:$0xff]  ;;  %v878_v40 = vld [vmem:[#allocation6 + $0x50] sm:$0xff] }
  0x13   :  { %356 = vmatpush.msrb.mxu0 %v826_v22  ;;  %296 = vmatpush.msra.mxu1 %v832_v24  ;;  %v876_v39 = vld [vmem:[#allocation6 + $0x1b8] sm:$0xff]  ;;  %v882_v41 = vld [vmem:[#allocation6 + $0xb0] sm:$0xff]  ;;  %v890_v44 = vld [vmem:[#allocation6 + $0x48] sm:$0xff] }
  0x14   :  { %336 = vmatpush.msra.mxu3 %v834_v25  ;;  %314 = vmatpush.msra.mxu2 %v854_v32  ;;  %v884_v42 = vld [vmem:[#allocation6 + $0x130] sm:$0xff]  ;;  %v894_v45 = vld [vmem:[#allocation6 + $0xa8] sm:$0xff]  ;;  %v904_v49 = vld [vmem:[#allocation6 + $0x40] sm:$0xff] }
  0x15   :  { %357 = vmatpush.msrb.mxu0 %v838_v26  ;;  %297 = vmatpush.msra.mxu1 %v844_v28  ;;  %v888_v43 = vld [vmem:[#allocation6 + $0x1b0] sm:$0xff]  ;;  %v896_v46 = vld [vmem:[#allocation6 + $0x128] sm:$0xff]  ;;  %v908_v50 = vld [vmem:[#allocation6 + $0xa0] sm:$0xff] }
  0x16   :  { %337 = vmatpush.msra.mxu3 %v846_v29  ;;  %315 = vmatpush.msra.mxu2 %v866_v36  ;;  %v900_v47 = vld [vmem:[#allocation6 + $0x1a8] sm:$0xff]  ;;  %v910_v51 = vld [vmem:[#allocation6 + $0x120] sm:$0xff]  ;;  %v916_v53 = vld [vmem:[#allocation6 + $0x38] sm:$0xff] }
  0x17   :  { %358 = vmatpush.msrb.mxu0 %v850_v30  ;;  %298 = vmatpush.msra.mxu1 %v858_v33  ;;  %v914_v52 = vld [vmem:[#allocation6 + $0x1a0] sm:$0xff]  ;;  %v920_v54 = vld [vmem:[#allocation6 + $0x98] sm:$0xff]  ;;  %v930_v58 = vld [vmem:[#allocation6 + $0x30] sm:$0xff] }
  0x18   :  { %338 = vmatpush.msra.mxu3 %v860_v34  ;;  %316 = vmatpush.msra.mxu2 %v878_v40  ;;  %v922_v55 = vld [vmem:[#allocation6 + $0x118] sm:$0xff]  ;;  %v934_v59 = vld [vmem:[#allocation6 + $0x90] sm:$0xff]  ;;  %v948_v1 = vld [vmem:[#allocation6 + $0x28] sm:$0xff] }
  0x19   :  { %359 = vmatpush.msrb.mxu0 %v864_v35  ;;  %299 = vmatpush.msra.mxu1 %v870_v37  ;;  %v928_v57 = vld [vmem:[#allocation6 + $0x198] sm:$0xff]  ;;  %1116 = vst [vmem:[#allocation15_spill] sm:$0xff] %v934_v59  ;;  %v936_v60 = vld [vmem:[#allocation6 + $0x110] sm:$0xff]  ;;  %v952_v2 = vld [vmem:[#allocation6 + $0x88] sm:$0xff] }
  0x1a   :  { %664 = vmatmul.msk.f32.gmra.mxu0 %vm176_vm0, %v172_v4  ;;  %339 = vmatpush.msra.mxu3 %v872_v38  ;;  %1117 = vst [vmem:[#allocation16_spill] sm:$0xff] %v936_v60  ;;  %v946_v0 = vld [vmem:[#allocation6 + $0x190] sm:$0xff]  ;;  %v954_v3 = vld [vmem:[#allocation6 + $0x108] sm:$0xff] }
  0x1b   :  { %360 = vmatpush.msrb.mxu0 %v876_v39  ;;  %300 = vmatpush.msra.mxu1 %v882_v41  ;;  %1118 = vst [vmem:[#allocation17_spill] sm:$0xff] %v946_v0 }
  0x1c   :  { %340 = vmatpush.msra.mxu3 %v884_v42  ;;  %317 = vmatpush.msra.mxu2 %v890_v44  ;;  %1119 = vst [vmem:[#allocation18_spill] sm:$0xff] %v952_v2 }
  0x1d   :  { %361 = vmatpush.msrb.mxu0 %v888_v43  ;;  %301 = vmatpush.msra.mxu1 %v894_v45  ;;  %1120 = vst [vmem:[#allocation19_spill] sm:$0xff] %v954_v3 }
  0x1e   :  { %341 = vmatpush.msra.mxu3 %v896_v46  ;;  %318 = vmatpush.msra.mxu2 %v904_v49 }
  0x1f   :  { %362 = vmatpush.msrb.mxu0 %v900_v47  ;;  %302 = vmatpush.msra.mxu1 %v908_v50 }
  0x20   :  { %342 = vmatpush.msra.mxu3 %v910_v51  ;;  %319 = vmatpush.msra.mxu2 %v916_v53 }
  0x21   :  { %363 = vmatpush.msrb.mxu0 %v914_v52  ;;  %303 = vmatpush.msra.mxu1 %v920_v54 }
  0x22   :  { %665 = vmatmul.msk.f32.gmra.mxu0 %vm176_vm0, %v173_v5  ;;  %343 = vmatpush.msra.mxu3 %v922_v55 }
  0x23   :  { %364 = vmatpush.msrb.mxu0 %v928_v57  ;;  %320 = vmatpush.msra.mxu2 %v930_v58 }
  0x24   :  { %304 = vmatpush.msra.mxu1 %v934_v59  ;;  %344 = vmatpush.msra.mxu3 %v936_v60  ;;  %v963_v59 = vld [vmem:[#allocation6 + $0x20] sm:$0xff] }
  0x25   :  { %365 = vmatpush.msrb.mxu0 %v946_v0  ;;  %321 = vmatpush.msra.mxu2 %v948_v1  ;;  %v967_v0 = vld [vmem:[#allocation6 + $0x80] sm:$0xff] }
  0x26   :  { %305 = vmatpush.msra.mxu1 %v952_v2  ;;  %345 = vmatpush.msra.mxu3 %v954_v3  ;;  %v969_v60 = vld [vmem:[#allocation6 + $0x100] sm:$0xff]  ;;  %v978_v2 = vld [vmem:[#allocation6 + $0x18] sm:$0xff] }
  0x27   :  { %322 = vmatpush.msra.mxu2 %v963_v59 }
  0x28   :  { %306 = vmatpush.msra.mxu1 %v967_v0  ;;  %346 = vmatpush.msra.mxu3 %v969_v60 }
  0x29   :  { %323 = vmatpush.msra.mxu2 %v978_v2 }
  0x2a   :  { %375 = vmatpush.msrb.mxu1 %v780_v6  ;;  %415 = vmatpush.msrb.mxu3 %v782_v7  ;;  %v996_v7 = vld [vmem:[#allocation6] sm:$0xff] }
  0x2c   :  { %376 = vmatpush.msrb.mxu1 %v789_v9  ;;  %416 = vmatpush.msrb.mxu3 %v791_v10 }
  0x2e   :  { %377 = vmatpush.msrb.mxu1 %v798_v12  ;;  %417 = vmatpush.msrb.mxu3 %v800_v13 }
  0x30   :  { %378 = vmatpush.msrb.mxu1 %v809_v16  ;;  %418 = vmatpush.msrb.mxu3 %v811_v17 }
  0x32   :  { %379 = vmatpush.msrb.mxu1 %v820_v20  ;;  %419 = vmatpush.msrb.mxu3 %v822_v21 }
  0x34   :  { %380 = vmatpush.msrb.mxu1 %v832_v24  ;;  %420 = vmatpush.msrb.mxu3 %v834_v25  ;;  %v1124_v25 = vld [vmem:[#allocation16_spill] sm:$0xff] }
  0x36   :  { %381 = vmatpush.msrb.mxu1 %v844_v28  ;;  %421 = vmatpush.msrb.mxu3 %v846_v29  ;;  %v1127_v29 = vld [vmem:[#allocation19_spill] sm:$0xff] }
  0x38   :  { %382 = vmatpush.msrb.mxu1 %v858_v33  ;;  %422 = vmatpush.msrb.mxu3 %v860_v34  ;;  %v1061_v33 = vld [vmem:[%s1101_s3] sm:$0x3f]  ;;  %s733_s3 = smov [#allocation9]  }
  0x39   :  { %s650_s7 = sshll.u32 %s733_s3, 4  ;;  %s651_s7 = int_to_ptr.vmem [resolvable:$true] %s650_s7 }
  0x3a   :  { %383 = vmatpush.msrb.mxu1 %v870_v37  ;;  %423 = vmatpush.msrb.mxu3 %v872_v38 }
  0x3c   :  { %384 = vmatpush.msrb.mxu1 %v882_v41  ;;  %424 = vmatpush.msrb.mxu3 %v884_v42 }
  0x3e   :  { %385 = vmatpush.msrb.mxu1 %v894_v45  ;;  %425 = vmatpush.msrb.mxu3 %v896_v46 }
  0x40   :  { %386 = vmatpush.msrb.mxu1 %v908_v50  ;;  %426 = vmatpush.msrb.mxu3 %v910_v51 }
  0x42   :  { %387 = vmatpush.msrb.mxu1 %v920_v54  ;;  %427 = vmatpush.msrb.mxu3 %v922_v55 }
  0x44   :  { %428 = vmatpush.msrb.mxu3 %v1124_v25  ;;  %v169_v25 = vld [vmem:[#allocation6 + $0x3f8] sm:$0xff] }
  0x46   :  { %429 = vmatpush.msrb.mxu3 %v1127_v29 }
  0x48   :  { %430 = vmatpush.msrb.mxu3 %v969_v60 }
  0x87   :  { %v806_v15 = vpop.f32.mrf.mxu0 }
  0x88   :  { %1113 = vst [vmem:[#allocation12_spill] sm:$0xff] %v806_v15  ;;  %v227_v61 = vmul.f32 %v806_v15, %v806_v15 }
  0x8f   :  { %v852_v31 = vpop.f32.mrf.mxu0  ;;  %v1129_v41 = vld [vmem:[#allocation12_spill] sm:$0xff] }
  0x90   :  { %1114 = vst [vmem:[#allocation13_spill] sm:$0xff] %v852_v31  ;;  %v228_v56 = vmul.f32 %v852_v31, %v852_v31  ;;  %v218_v62 = vadd.f32 %v852_v31, %v806_v15  ;;  %v959_v31 = vld [vmem:[#allocation6 + $0x188] sm:$0xff] }
  0x91   :  { %1121 = vst [vmem:[#allocation20_spill] sm:$0xff] %v959_v31  ;;  %366 = vmatpush.msrb.mxu0 %v959_v31 }
  0x92   :  { %v231_v4 = vadd.f32 %v228_v56, %v227_v61 }
  0x97   :  { %v902_v48 = vpop.f32.mrf.mxu0 }
  0x98   :  { %1115 = vst [vmem:[#allocation14_spill] sm:$0xff] %v902_v48  ;;  %v229_v63 = vmul.f32 %v902_v48, %v902_v48  ;;  %v219_v5 = vadd.f32 %v218_v62, %v902_v48  ;;  %v976_v48 = vld [vmem:[#allocation6 + $0x180] sm:$0xff] }
  0x99   :  { %367 = vmatpush.msrb.mxu0 %v976_v48 }
  0x9a   :  { %v232_v56 = vadd.f32 %v231_v4, %v229_v63  ;;  %v984_v63 = vld [vmem:[#allocation6 + $0x10] sm:$0xff] }
  0x9b   :  { %436 = vmatpush.msra.mxu0 %v784_v8  ;;  %324 = vmatpush.msra.mxu2 %v984_v63 }
  0x9d   :  { %437 = vmatpush.msra.mxu0 %v793_v11 }
  0x9f   :  { %v961_v15 = vpop.f32.mrf.mxu0  ;;  %438 = vmatpush.msra.mxu0 %v802_v14  ;;  %v1131_v45 = vld [vmem:[#allocation14_spill] sm:$0xff] }
  0xa0   :  { %1122 = vst [vmem:[#allocation21_spill] sm:$0xff] %v961_v15  ;;  %v220_v61 = vadd.f32 %v219_v5, %v961_v15  ;;  %v230_v62 = vmul.f32 %v961_v15, %v961_v15  ;;  %v990_v15 = vld [vmem:[#allocation6 + $0x8] sm:$0xff] }
  0xa1   :  { %325 = vmatpush.msra.mxu2 %v990_v15  ;;  %439 = vmatpush.msra.mxu0 %v813_v18 }
  0xa2   :  { %v221_v31 = vrot.slane %v220_v61, 4  ;;  %v233_v3 = vadd.f32 %v232_v56, %v230_v62 }
  0xa3   :  { %326 = vmatpush.msra.mxu2 %v996_v7  ;;  %440 = vmatpush.msra.mxu0 %v826_v22  ;;  %v732_v22 = vmov 0.0  }
  0xa4   :  { %v222_v4 = vadd.f32 %v221_v31, %v220_v61  ;;  %v234_v5 = vrot.slane %v233_v3, 4  ;;  %284 = vst [vmem:[#allocation5] sm:$0x3] %v732_v22 }
  0xa5   :  { %395 = vmatpush.msrb.mxu2 %v817_v19  ;;  %441 = vmatpush.msra.mxu0 %v838_v26  ;;  %v1125_v26 = vld [vmem:[#allocation17_spill] sm:$0xff]  ;;  %277 = vst [vmem:[#allocation2 + $0xa] sm:$0x3] %v732_v22 }
  0xa6   :  { %v223_v56 = vrot.slane %v222_v4, 2  ;;  %v235_v6 = vadd.f32 %v234_v5, %v233_v3  ;;  %278 = vst [vmem:[#allocation3] sm:$0x3] %v732_v22 }
  0xa7   :  { %396 = vmatpush.msrb.mxu2 %v828_v23  ;;  %442 = vmatpush.msra.mxu0 %v850_v30  ;;  %v1123_v23 = vld [vmem:[#allocation15_spill] sm:$0xff]  ;;  %v1128_v30 = vld [vmem:[#allocation20_spill] sm:$0xff]  ;;  %517 = vst [vmem:[#allocation3] sm:$0x3] %v732_v22 }
  0xa8   :  { %v224_v8 = vadd.f32 %v223_v56, %v222_v4  ;;  %v236_v9 = vrot.slane %v235_v6, 2  ;;  %388 = vmatpush.msrb.mxu1 %v1123_v23  ;;  %v152_v4 = vld [vmem:[#allocation6 + $0x378] sm:$0xff] }
  0xa9   :  { %397 = vmatpush.msrb.mxu2 %v840_v27  ;;  %443 = vmatpush.msra.mxu0 %v864_v35  ;;  %v1126_v27 = vld [vmem:[#allocation18_spill] sm:$0xff] }
  0xaa   :  { %v225_v10 = vrot.slane %v224_v8, 1  ;;  %v237_v11 = vadd.f32 %v236_v9, %v235_v6  ;;  %389 = vmatpush.msrb.mxu1 %v1126_v27  ;;  %v151_v9 = vld [vmem:[#allocation6 + $0x370] sm:$0xff] }
  0xab   :  { %398 = vmatpush.msrb.mxu2 %v854_v32  ;;  %444 = vmatpush.msra.mxu0 %v876_v39 }
  0xac   :  { %v226_v12 = vadd.f32 %v225_v10, %v224_v8  ;;  %v238_v13 = vrot.slane %v237_v11, 1  ;;  %390 = vmatpush.msrb.mxu1 %v967_v0  ;;  %v134_v8 = vld [vmem:[#allocation6 + $0x2f0] sm:$0xff] }
  0xad   :  { %399 = vmatpush.msrb.mxu2 %v866_v36  ;;  %445 = vmatpush.msra.mxu0 %v888_v43  ;;  %v1130_v43 = vld [vmem:[#allocation13_spill] sm:$0xff] }
  0xae   :  { %v239_v14 = vadd.f32 %v238_v13, %v237_v11  ;;  %v1012_v16 = vmul.f32 0.03125, %v226_v12 }
  0xaf   :  { %400 = vmatpush.msrb.mxu2 %v878_v40  ;;  %446 = vmatpush.msra.mxu0 %v900_v47  ;;  %v1132_v47 = vld [vmem:[#allocation21_spill] sm:$0xff] }
  0xb0   :  { %v241_v17 = vmul.f32 0.03125, %v239_v14  ;;  %v242_v18 = vmul.f32 %v1012_v16, %v1012_v16  ;;  %v133_v14 = vld [vmem:[#allocation6 + $0x2e8] sm:$0xff] }
  0xb1   :  { %401 = vmatpush.msrb.mxu2 %v890_v44  ;;  %447 = vmatpush.msra.mxu0 %v914_v52 }
  0xb2   :  { %v243_v19 = vsub.f32 %v241_v17, %v242_v18 }
  0xb3   :  { %402 = vmatpush.msrb.mxu2 %v904_v49  ;;  %448 = vmatpush.msra.mxu0 %v928_v57 }
  0xb4   :  { %v244_v20 = vadd.f32 1e-05, %v243_v19 }
  0xb5   :  { %403 = vmatpush.msrb.mxu2 %v916_v53  ;;  %449 = vmatpush.msra.mxu0 %v1125_v26  ;;  %v131_v26 = vld [vmem:[#allocation6 + $0x2d8] sm:$0xff] }
  0xb6   :  { %671 = vrsqrt.f32 %v244_v20  ;;  %vm251_vm2 = vweird.f32 %v244_v20 }
  0xb7   :  { %404 = vmatpush.msrb.mxu2 %v930_v58  ;;  %450 = vmatpush.msra.mxu0 %v1128_v30  ;;  %v148_v30 = vld [vmem:[#allocation6 + $0x358] sm:$0xff] }
  0xb9   :  { %405 = vmatpush.msrb.mxu2 %v948_v1  ;;  %451 = vmatpush.msra.mxu0 %v976_v48 }
  0xbb   :  { %406 = vmatpush.msrb.mxu2 %v963_v59 }
  0xbc   :  { %v672_v21 = vpop.eup %671 }
  0xbd   :  { %v246_v24 = vmul.f32 %v672_v21, %v244_v20  ;;  %407 = vmatpush.msrb.mxu2 %v978_v2  ;;  %vm252_vm1 = vweird.f32 %v672_v21  ;;  %v132_v20 = vld [vmem:[#allocation6 + $0x2e0] sm:$0xff] }
  0xbe   :  { %vm253_vm3 = vmor %vm251_vm2, %vm252_vm1 }
  0xbf   :  { %v247_v28 = vmul.f32 %v672_v21, %v246_v24  ;;  %408 = vmatpush.msrb.mxu2 %v984_v63  ;;  %v135_v63 = vld [vmem:[#allocation6 + $0x2f8] sm:$0xff] }
  0xc0   :  { %v118_v24 = vld [vmem:[#allocation6 + $0x278] sm:$0xff] }
  0xc1   :  { %v248_v31 = vmul.f32 0.5, %v247_v28  ;;  %409 = vmatpush.msrb.mxu2 %v990_v15 }
  0xc3   :  { %v249_v32 = vsub.f32 1.5, %v248_v31  ;;  %410 = vmatpush.msrb.mxu2 %v996_v7  ;;  %v117_v31 = vld [vmem:[#allocation6 + $0x270] sm:$0xff] }
  0xc5   :  { %v250_v34 = vmul.f32 %v672_v21, %v249_v32  ;;  %v168_v32 = vld [vmem:[#allocation6 + $0x3f0] sm:$0xff] }
  0xc7   :  { %v254_v35 = vsel %vm253_vm3, %v672_v21, %v250_v34  ;;  %v149_v21 = vld [vmem:[#allocation6 + $0x360] sm:$0xff]  ;;  %v130_v34 = vld [vmem:[#allocation6 + $0x2d0] sm:$0xff] }
  0xc8   :  { %v255_v36 = vmul.f32 %v254_v35, %v1061_v33 }
  0xca   :  { %v256_v37 = vmul.f32 %v255_v36, %v1012_v16  ;;  %v261_v38 = vperm.slane %v255_v36, 0  ;;  %v150_v16 = vld [vmem:[#allocation6 + $0x368] sm:$0xff] }
  0xcc   :  { %v258_v39 = vrot.slane %v256_v37, 7  ;;  %v262_v42 = vmul.f32 %v261_v38, %v1129_v41  ;;  %v263_v44 = vmul.f32 %v261_v38, %v1130_v43  ;;  %v264_v46 = vmul.f32 %v261_v38, %v1131_v45  ;;  %v129_v41 = vld [vmem:[#allocation6 + $0x2c8] sm:$0xff] }
  0xcd   :  { %v265_v15 = vmul.f32 %v261_v38, %v1132_v47  ;;  %v147_v38 = vld [vmem:[#allocation6 + $0x350] sm:$0xff]  ;;  %v146_v45 = vld [vmem:[#allocation6 + $0x348] sm:$0xff]  ;;  %v166_v47 = vld [vmem:[#allocation6 + $0x3e0] sm:$0xff] }
  0xce   :  { %v260_v40 = vsub.f32 %v1061_v33, %v258_v39  ;;  %v116_v39 = vld [vmem:[#allocation6 + $0x268] sm:$0xff] }
  0xd0   :  { %v266_v48 = vperm.slane %v260_v40, 1  ;;  %v167_v40 = vld [vmem:[#allocation6 + $0x3e8] sm:$0xff] }
  0xd2   :  { %v267_v49 = vadd.f32 %v266_v48, %v262_v42  ;;  %v268_v50 = vadd.f32 %v266_v48, %v263_v44  ;;  %v269_v51 = vadd.f32 %v266_v48, %v264_v46  ;;  %v270_v52 = vadd.f32 %v266_v48, %v265_v15  ;;  %v115_v46 = vld [vmem:[#allocation6 + $0x260] sm:$0xff] }
  0xd3   :  { %v128_v15 = vld [vmem:[#allocation6 + $0x2c0] sm:$0xff] }
  0xd4   :  { %v271_v53 = vmax.f32 %v267_v49, 0.0  ;;  %v272_v54 = vmax.f32 %v268_v50, 0.0  ;;  %v273_v55 = vmax.f32 %v269_v51, 0.0  ;;  %v274_v57 = vmax.f32 %v270_v52, 0.0  ;;  %v145_v51 = vld [vmem:[#allocation6 + $0x340] sm:$0xff]  ;;  %v114_v52 = vld [vmem:[#allocation6 + $0x258] sm:$0xff] }
  0xd6   :  { %276 = vst [vmem:[#allocation2 + $0x2] sm:$0xff] %v271_v53  ;;  %307 = vmatmul.f32.vlgmr.msra.gmra.mxu1 %v271_v53  ;;  %347 = vmatmul.f32.vlgmr.msra.gmra.mxu3 %v272_v54  ;;  %v165_v53 = vld [vmem:[#allocation6 + $0x3d8] sm:$0xff] }
  0xd7   :  { %368 = vmatmul.f32.vlgmr.msrb.gmra.mxu0 %v273_v55  ;;  %285 = vst [vmem:[#allocation5 + $0x2] sm:$0xff] %v274_v57  ;;  %524 = vmatpush.msra.mxu1 %v135_v63  ;;  %v143_v63 = vld [vmem:[#allocation6 + $0x330] sm:$0xff] }
  0xd8   :  { %564 = vmatpush.msra.mxu3 %v152_v4  ;;  %585 = vmatpush.msrb.mxu0 %v169_v25  ;;  %v112_v4 = vld [vmem:[#allocation6 + $0x248] sm:$0xff]  ;;  %v160_v25 = vld [vmem:[#allocation6 + $0x3b0] sm:$0xff] }
  0xd9   :  { %525 = vmatpush.msra.mxu1 %v134_v8 }
  0xda   :  { %565 = vmatpush.msra.mxu3 %v151_v9  ;;  %586 = vmatpush.msrb.mxu0 %v168_v32  ;;  %v142_v9 = vld [vmem:[#allocation6 + $0x328] sm:$0xff] }
  0xdb   :  { %526 = vmatpush.msra.mxu1 %v133_v14 }
  0xdc   :  { %566 = vmatpush.msra.mxu3 %v150_v16  ;;  %587 = vmatpush.msrb.mxu0 %v167_v40  ;;  %v141_v16 = vld [vmem:[#allocation6 + $0x320] sm:$0xff]  ;;  %v157_v40 = vld [vmem:[#allocation6 + $0x398] sm:$0xff] }
  0xdd   :  { %v374_v58 = vld [vmem:[#allocation2 + $0x4] sm:$0xff]  ;;  %527 = vmatpush.msra.mxu1 %v132_v20 }
  0xde   :  { %391 = vmatmul.f32.vlgmr.msrb.gmra.mxu1 %v273_v55  ;;  %431 = vmatmul.f32.vlgmr.msrb.gmra.mxu3 %v274_v57  ;;  %516 = vst [vmem:[#allocation2 + $0xa] sm:$0x3] %v732_v22  ;;  %v287_v59 = vld [vmem:[#allocation5] sm:$0xff] }
  0xdf   :  { %452 = vmatmul.f32.vlgmr.msra.gmra.mxu0 %v374_v58  ;;  %327 = vmatmul.f32.vlgmr.msra.gmra.mxu2 %v287_v59  ;;  %v144_v59 = vld [vmem:[#allocation6 + $0x338] sm:$0xff] }
  0xe0   :  { %567 = vmatpush.msra.mxu3 %v149_v21  ;;  %544 = vmatpush.msra.mxu2 %v118_v24  ;;  %v109_v24 = vld [vmem:[#allocation6 + $0x230] sm:$0xff] }
  0xe1   :  { %528 = vmatpush.msra.mxu1 %v131_v26  ;;  %588 = vmatpush.msrb.mxu0 %v166_v47  ;;  %v122_v26 = vld [vmem:[#allocation6 + $0x290] sm:$0xff] }
  0xe2   :  { %568 = vmatpush.msra.mxu3 %v148_v30  ;;  %545 = vmatpush.msra.mxu2 %v117_v31  ;;  %v159_v30 = vld [vmem:[#allocation6 + $0x3a8] sm:$0xff] }
  0xe3   :  { %529 = vmatpush.msra.mxu1 %v130_v34  ;;  %589 = vmatpush.msrb.mxu0 %v165_v53  ;;  %v121_v31 = vld [vmem:[#allocation6 + $0x288] sm:$0xff] }
  0xe4   :  { %569 = vmatpush.msra.mxu3 %v147_v38  ;;  %546 = vmatpush.msra.mxu2 %v116_v39  ;;  %v138_v34 = vld [vmem:[#allocation6 + $0x308] sm:$0xff]  ;;  %v137_v38 = vld [vmem:[#allocation6 + $0x300] sm:$0xff]  ;;  %v106_v39 = vld [vmem:[#allocation6 + $0x218] sm:$0xff] }
  0xe5   :  { %530 = vmatpush.msra.mxu1 %v129_v41  ;;  %v105_v41 = vld [vmem:[#allocation6 + $0x210] sm:$0xff] }
  0xe6   :  { %570 = vmatpush.msra.mxu3 %v146_v45  ;;  %547 = vmatpush.msra.mxu2 %v115_v46  ;;  %v103_v45 = vld [vmem:[#allocation6 + $0x200] sm:$0xff] }
  0xe7   :  { %411 = vmatmul.f32.vlgmr.msrb.gmra.mxu2 %v272_v54  ;;  %531 = vmatpush.msra.mxu1 %v128_v15  ;;  %v127_v54 = vld [vmem:[#allocation6 + $0x2b8] sm:$0xff]  ;;  %v154_v46 = vld [vmem:[#allocation6 + $0x380] sm:$0xff] }
  0xe8   :  { %571 = vmatpush.msra.mxu3 %v145_v51  ;;  %548 = vmatpush.msra.mxu2 %v114_v52 }
  0xe9   :  { %532 = vmatpush.msra.mxu1 %v127_v54 }
  0xea   :  { %572 = vmatpush.msra.mxu3 %v144_v59 }
  0xec   :  { %573 = vmatpush.msra.mxu3 %v143_v63 }
  0xee   :  { %574 = vmatpush.msra.mxu3 %v142_v9 }
  0xf0   :  { %575 = vmatpush.msra.mxu3 %v141_v16 }
 0x153   :  { %v308_v60 = vpop.f32.mrf.mxu1 }
 0x154   :  { %v369_v3 = vpop.f32.mrf.mxu0 }
 0x159   :  { %v348_v1 = vpop.f32.mrf.mxu3 }
 0x15b   :  { %v392_v6 = vpop.f32.mrf.mxu1 }
 0x15c   :  { %v453_v19 = vpop.f32.mrf.mxu0 }
 0x161   :  { %v432_v13 = vpop.f32.mrf.mxu3 }
 0x162   :  { %v328_v0 = vpop.f32.mrf.mxu2 }
 0x163   :  { %v329_v2 = vadd.f32 %v328_v0, %v308_v60  ;;  %v113_v60 = vld [vmem:[#allocation6 + $0x250] sm:$0xff] }
 0x164   :  { %v164_v0 = vld [vmem:[#allocation6 + $0x3d0] sm:$0xff]  ;;  %549 = vmatpush.msra.mxu2 %v113_v60 }
 0x165   :  { %v351_v61 = vadd.f32 %v348_v1, %v329_v2  ;;  %v126_v1 = vld [vmem:[#allocation6 + $0x2b0] sm:$0xff]  ;;  %590 = vmatpush.msrb.mxu0 %v164_v0 }
 0x166   :  { %533 = vmatpush.msra.mxu1 %v126_v1  ;;  %550 = vmatpush.msra.mxu2 %v112_v4 }
 0x167   :  { %v1072_v62 = vadd.f32 %v369_v3, %v351_v61 }
 0x169   :  { %v457_v5 = vrot.slane %v1072_v62, 4  ;;  %v463_v56 = vmul.f32 %v1072_v62, %v1072_v62 }
 0x16a   :  { %v412_v7 = vpop.f32.mrf.mxu2 }
 0x16b   :  { %v458_v10 = vadd.f32 %v457_v5, %v1072_v62  ;;  %v464_v11 = vrot.slane %v463_v56, 4  ;;  %v413_v12 = vadd.f32 %v412_v7, %v392_v6  ;;  %v163_v5 = vld [vmem:[#allocation6 + $0x3c8] sm:$0xff] }
 0x16c   :  { %591 = vmatpush.msrb.mxu0 %v163_v5 }
 0x16d   :  { %v465_v17 = vadd.f32 %v464_v11, %v463_v56  ;;  %v435_v18 = vadd.f32 %v432_v13, %v413_v12  ;;  %v459_v22 = vrot.slane %v458_v10, 2  ;;  %v125_v56 = vld [vmem:[#allocation6 + $0x2a8] sm:$0xff]  ;;  %v162_v11 = vld [vmem:[#allocation6 + $0x3c0] sm:$0xff] }
 0x16e   :  { %534 = vmatpush.msra.mxu1 %v125_v56  ;;  %v124_v12 = vld [vmem:[#allocation6 + $0x2a0] sm:$0xff]  ;;  %592 = vmatpush.msrb.mxu0 %v162_v11 }
 0x16f   :  { %v1078_v23 = vadd.f32 %v453_v19, %v435_v18  ;;  %v466_v27 = vrot.slane %v465_v17, 2  ;;  %v460_v35 = vadd.f32 %v459_v22, %v458_v10  ;;  %v111_v10 = vld [vmem:[#allocation6 + $0x240] sm:$0xff]  ;;  %v161_v18 = vld [vmem:[#allocation6 + $0x3b8] sm:$0xff] }
 0x170   :  { %551 = vmatpush.msra.mxu2 %v111_v10  ;;  %535 = vmatpush.msra.mxu1 %v124_v12  ;;  %v123_v19 = vld [vmem:[#allocation6 + $0x298] sm:$0xff] }
 0x171   :  { %v470_v28 = vrot.slane %v1078_v23, 4  ;;  %v477_v29 = vmul.f32 %v1078_v23, %v1078_v23  ;;  %v467_v42 = vadd.f32 %v466_v27, %v465_v17  ;;  %v461_v48 = vrot.slane %v460_v35, 1  ;;  %v110_v17 = vld [vmem:[#allocation6 + $0x238] sm:$0xff]  ;;  %593 = vmatpush.msrb.mxu0 %v161_v18 }
 0x172   :  { %552 = vmatpush.msra.mxu2 %v110_v17  ;;  %v140_v22 = vld [vmem:[#allocation6 + $0x318] sm:$0xff]  ;;  %536 = vmatpush.msra.mxu1 %v123_v19 }
 0x173   :  { %v471_v36 = vadd.f32 %v470_v28, %v1078_v23  ;;  %v478_v37 = vrot.slane %v477_v29, 4  ;;  %v468_v55 = vrot.slane %v467_v42, 1  ;;  %v462_v2 = vadd.f32 %v461_v48, %v460_v35  ;;  %576 = vmatpush.msra.mxu3 %v140_v22  ;;  %594 = vmatpush.msrb.mxu0 %v160_v25  ;;  %v139_v28 = vld [vmem:[#allocation6 + $0x310] sm:$0xff]  ;;  %v107_v35 = vld [vmem:[#allocation6 + $0x220] sm:$0xff] }
 0x174   :  { %553 = vmatpush.msra.mxu2 %v109_v24  ;;  %537 = vmatpush.msra.mxu1 %v122_v26 }
 0x175   :  { %v472_v43 = vrot.slane %v471_v36, 2  ;;  %v479_v44 = vadd.f32 %v478_v37, %v477_v29  ;;  %v469_v6 = vadd.f32 %v468_v55, %v467_v42  ;;  %v108_v29 = vld [vmem:[#allocation6 + $0x228] sm:$0xff]  ;;  %577 = vmatpush.msra.mxu3 %v139_v28  ;;  %595 = vmatpush.msrb.mxu0 %v159_v30  ;;  %v120_v37 = vld [vmem:[#allocation6 + $0x280] sm:$0xff]  ;;  %v156_v42 = vld [vmem:[#allocation6 + $0x390] sm:$0xff] }
 0x176   :  { %554 = vmatpush.msra.mxu2 %v108_v29  ;;  %538 = vmatpush.msra.mxu1 %v121_v31 }
 0x177   :  { %v473_v49 = vadd.f32 %v472_v43, %v471_v36  ;;  %v480_v50 = vrot.slane %v479_v44, 2  ;;  %v158_v36 = vld [vmem:[#allocation6 + $0x3a0] sm:$0xff]  ;;  %578 = vmatpush.msra.mxu3 %v138_v34  ;;  %v104_v43 = vld [vmem:[#allocation6 + $0x208] sm:$0xff] }
 0x178   :  { %555 = vmatpush.msra.mxu2 %v107_v35  ;;  %596 = vmatpush.msrb.mxu0 %v158_v36 }
 0x179   :  { %v474_v57 = vrot.slane %v473_v49, 1  ;;  %v481_v58 = vadd.f32 %v480_v50, %v479_v44  ;;  %539 = vmatpush.msra.mxu1 %v120_v37  ;;  %579 = vmatpush.msra.mxu3 %v137_v38  ;;  %v155_v44 = vld [vmem:[#allocation6 + $0x388] sm:$0xff] }
 0x17a   :  { %556 = vmatpush.msra.mxu2 %v106_v39  ;;  %597 = vmatpush.msrb.mxu0 %v157_v40 }
 0x17b   :  { %v475_v3 = vadd.f32 %v474_v57, %v473_v49  ;;  %v482_v61 = vrot.slane %v481_v58, 1 }
 0x17c   :  { %557 = vmatpush.msra.mxu2 %v105_v41  ;;  %598 = vmatpush.msrb.mxu0 %v156_v42 }
 0x17d   :  { %v476_v7 = vadd.f32 %v475_v3, %v462_v2  ;;  %v483_v8 = vadd.f32 %v482_v61, %v481_v58 }
 0x17e   :  { %558 = vmatpush.msra.mxu2 %v104_v43  ;;  %599 = vmatpush.msrb.mxu0 %v155_v44 }
 0x17f   :  { %v484_v13 = vadd.f32 %v483_v8, %v469_v6  ;;  %v1084_v14 = vmul.f32 0.0625, %v476_v7 }
 0x180   :  { %559 = vmatpush.msra.mxu2 %v103_v45  ;;  %600 = vmatpush.msrb.mxu0 %v154_v46 }
 0x181   :  { %v486_v20 = vmul.f32 0.0625, %v484_v13  ;;  %v487_v21 = vmul.f32 %v1084_v14, %v1084_v14 }
 0x183   :  { %v488_v27 = vsub.f32 %v486_v20, %v487_v21 }
 0x185   :  { %v489_v32 = vadd.f32 1e-05, %v488_v27 }
 0x187   :  { %673 = vrsqrt.f32 %v489_v32  ;;  %vm496_vm5 = vweird.f32 %v489_v32 }
 0x18d   :  { %v674_v47 = vpop.eup %673 }
 0x18e   :  { %v491_v15 = vmul.f32 %v674_v47, %v489_v32  ;;  %vm497_vm4 = vweird.f32 %v674_v47 }
 0x18f   :  { %vm498_vm6 = vmor %vm496_vm5, %vm497_vm4 }
 0x190   :  { %v492_v48 = vmul.f32 %v674_v47, %v491_v15 }
 0x192   :  { %v493_v49 = vmul.f32 0.5, %v492_v48 }
 0x194   :  { %v494_v50 = vsub.f32 1.5, %v493_v49 }
 0x196   :  { %v495_v51 = vmul.f32 %v674_v47, %v494_v50 }
 0x198   :  { %v499_v52 = vsel %vm498_vm6, %v674_v47, %v495_v51 }
 0x199   :  { %v500_v53 = vmul.f32 %v499_v52, %v1061_v33 }
 0x19b   :  { %v501_v54 = vmul.f32 %v500_v53, %v1084_v14  ;;  %v506_v57 = vperm.slane %v500_v53, 2 }
 0x19d   :  { %v503_v55 = vrot.slane %v501_v54, 7  ;;  %v507_v59 = vmul.f32 %v506_v57, %v1072_v62  ;;  %v511_v0 = vmul.f32 %v506_v57, %v1078_v23 }
 0x19f   :  { %v505_v58 = vsub.f32 %v1061_v33, %v503_v55 }
 0x1a1   :  { %v508_v60 = vperm.slane %v505_v58, 3 }
 0x1a3   :  { %v509_v1 = vadd.f32 %v508_v60, %v507_v59  ;;  %v512_v2 = vadd.f32 %v511_v0, %v508_v60 }
 0x1a5   :  { %v510_v3 = vmax.f32 %v509_v1, 0.0  ;;  %v513_v61 = vmax.f32 %v512_v2, 0.0 }
 0x1a7   :  { %515 = vst [vmem:[#allocation2 + $0x2] sm:$0xff] %v510_v3  ;;  %540 = vmatmul.f32.vlgmr.msra.gmra.mxu1 %v510_v3  ;;  %580 = vmatmul.f32.vlgmr.msra.gmra.mxu3 %v513_v61 }
 0x1a8   :  { %518 = vst [vmem:[#allocation3 + $0x2] sm:$0xff] %v513_v61 }
 0x1ae   :  { %v523_v63 = vld [vmem:[#allocation2 + $0x4] sm:$0xff] }
 0x1af   :  { %v520_v4 = vld [vmem:[#allocation3] sm:$0xff]  ;;  %601 = vmatmul.f32.vlgmr.msrb.gmra.mxu0 %v523_v63 }
 0x1b0   :  { %560 = vmatmul.f32.vlgmr.msra.gmra.mxu2 %v520_v4 }
 0x224   :  { %v541_v5 = vpop.f32.mrf.mxu1 }
 0x22a   :  { %v581_v7 = vpop.f32.mrf.mxu3 }
 0x22c   :  { %v602_v8 = vpop.f32.mrf.mxu0 }
 0x233   :  { %v561_v56 = vpop.f32.mrf.mxu2 }
 0x234   :  { %v562_v6 = vadd.f32 %v561_v56, %v541_v5 }
 0x236   :  { %v584_v62 = vadd.f32 %v581_v7, %v562_v6 }
 0x238   :  { %v605_v9 = vadd.f32 %v602_v8, %v584_v62 }
 0x23a   :  { %v606_v23 = vrot.slane %v605_v9, 4  ;;  %v612_v10 = vmul.f32 %v605_v9, %v605_v9 }
 0x23c   :  { %v607_v11 = vadd.f32 %v606_v23, %v605_v9  ;;  %v613_v12 = vrot.slane %v612_v10, 4 }
 0x23e   :  { %v608_v13 = vrot.slane %v607_v11, 2  ;;  %v614_v14 = vadd.f32 %v613_v12, %v612_v10 }
 0x240   :  { %v609_v16 = vadd.f32 %v608_v13, %v607_v11  ;;  %v615_v17 = vrot.slane %v614_v14, 2 }
 0x242   :  { %v610_v18 = vrot.slane %v609_v16, 1  ;;  %v616_v19 = vadd.f32 %v615_v17, %v614_v14 }
 0x244   :  { %v617_v20 = vrot.slane %v616_v19, 1  ;;  %v611_v21 = vadd.f32 %v610_v18, %v609_v16 }
 0x246   :  { %v618_v22 = vadd.f32 %v617_v20, %v616_v19  ;;  %v619_v24 = vmul.f32 0.125, %v611_v21 }
 0x248   :  { %v620_v25 = vmul.f32 0.125, %v618_v22  ;;  %v621_v26 = vmul.f32 %v619_v24, %v619_v24 }
 0x24a   :  { %v622_v27 = vsub.f32 %v620_v25, %v621_v26 }
 0x24c   :  { %v623_v28 = vadd.f32 1e-05, %v622_v27 }
 0x24e   :  { %675 = vrsqrt.f32 %v623_v28  ;;  %vm630_vm8 = vweird.f32 %v623_v28 }
 0x254   :  { %v676_v29 = vpop.eup %675 }
 0x255   :  { %v625_v30 = vmul.f32 %v676_v29, %v623_v28  ;;  %vm631_vm7 = vweird.f32 %v676_v29 }
 0x256   :  { %vm632_vm9 = vmor %vm630_vm8, %vm631_vm7 }
 0x257   :  { %v626_v31 = vmul.f32 %v676_v29, %v625_v30 }
 0x259   :  { %v627_v32 = vmul.f32 0.5, %v626_v31 }
 0x25b   :  { %v628_v34 = vsub.f32 1.5, %v627_v32 }
 0x25d   :  { %v629_v35 = vmul.f32 %v676_v29, %v628_v34 }
 0x25f   :  { %v633_v36 = vsel %vm632_vm9, %v676_v29, %v629_v35 }
 0x260   :  { %v634_v37 = vmul.f32 %v633_v36, %v1061_v33 }
 0x262   :  { %v635_v38 = vmul.f32 %v634_v37, %v619_v24  ;;  %v640_v40 = vperm.slane %v634_v37, 4 }
 0x264   :  { %v637_v39 = vrot.slane %v635_v38, 7  ;;  %v641_v42 = vmul.f32 %v640_v40, %v605_v9 }
 0x266   :  { %v639_v41 = vsub.f32 %v1061_v33, %v637_v39 }
 0x268   :  { %v642_v43 = vperm.slane %v639_v41, 5 }
 0x26a   :  { %v643_v44 = vadd.f32 %v642_v43, %v641_v42 }
 0x26c   :  { %644 = vst [vmem:[#allocation9] sm:$0xff] %v643_v44 }
 0x26d   :  { %655 = dma.vmem_to_hbm [thread:$0]  %s651_s7, 128, %s653_s10, [#allocation8]  }
 0x26e   :  { %727 = dma.done.wait [#allocation8], 128  }
 0x26f   :  { %728 = vsyncadd [#allocation8], 4294967168 }
 0x270   :  { %660 = vsyncpa [#allocation7], 1 }
 0x271   :  { %661 = vsyncpa [#allocation8], 1 }

</bundles_post_ra>
